<compile_context>
chip_gen: v7x
topology: tpu7x:2x2x1
jax: 0.10.0
libtpu: 0.0.40
codegen_flags: <defaults>
</compile_context>

<pallas_src>
import functools

import jax
import jax.numpy as jnp
from jax.experimental import pallas as pl
from jax.experimental.pallas import tpu as pltpu


# ---------------------------------------------------------------------------------------------
# Kernel 1 (once per batch): ctx2 = ( blockdiag(scale) * (softmax_seq(K)^T @ V) ) @ Wlin
# ---------------------------------------------------------------------------------------------
def _ctx_kernel(cond_ref, wkv_ref, wlin_ref, blk_scale_ref, ctx_ref, *, d_model, recip_approx):
    # cond_ref  : (1, M, Dc) full k/v-side sequence for this batch
    # wkv_ref   : (Dc, 2*dm) fused [K_heads | V_heads] weight, compute dtype
    # wlin_ref  : (dm, dm)   output projection, compute dtype
    # blk_scale : (dm, dm)   f32 block-diagonal head mask with the q-scale folded in
    # ctx_ref   : (1, dm, dm) f32 output (per-batch folded context)
    cd = wkv_ref.dtype
    xc = cond_ref[0].astype(cd)                                                # (M, Dc)

    # fused K|V projection: one Dq-deep dot instead of two
    kv = jnp.dot(xc, wkv_ref[...], preferred_element_type=jnp.float32)         # (M, 2*dm) f32
    k = kv[:, :d_model]
    v = kv[:, d_model:]

    # softmax over the sequence axis (per head-channel), f32 math (v5e-safe)
    k = k - jnp.max(k, axis=0, keepdims=True)
    ek = jnp.exp(k)
    k_s = ek * pl.reciprocal(jnp.sum(ek, axis=0, keepdims=True), approx=recip_approx)

    # ctx_full[i, j] = sum_n k_s[n, i] * v[n, j]  -> one 128-wide MXU dot (once per batch)
    ctx = jnp.dot(k_s.T.astype(cd), v.astype(cd),
                  preferred_element_type=jnp.float32)                          # (dm, dm) f32

    # block-diagonal head masking with the q-scale folded in, then fold in Wlin:
    # out = (q_s @ blockdiag_ctx) @ Wlin == q_s @ (blockdiag_ctx @ Wlin)  (lin is linear)
    ctx = ctx * blk_scale_ref[...]
    ctx2 = jnp.dot(ctx.astype(cd), wlin_ref[...],
                   preferred_element_type=jnp.float32)                         # (dm, dm) f32
    ctx_ref[0] = ctx2                                                          # 64 KiB / batch


# ---------------------------------------------------------------------------------------------
# Kernel 2 (every (batch, seq-tile)): y = softmax_head(Q) @ ctx2 + b_lin
# ---------------------------------------------------------------------------------------------
def _attn_kernel(x_ref, wq_ref, blk_ones_ref, ctx_ref, blin_ref, out_ref, *, recip_approx):
    # x_ref     : (1, TN, Dq) q-side sequence tile
    # wq_ref    : (Dq, dm) compute dtype ; blk_ones: (dm, dm) compute-dtype block-diag 1/0 mask
    # ctx_ref   : (1, dm, dm) f32 folded per-batch context ; blin: (1, dm) f32
    # out_ref   : (1, TN, dm)
    cd = wq_ref.dtype
    xt = x_ref[0].astype(cd)                                                   # (TN, Dq)
    q = jnp.dot(xt, wq_ref[...], preferred_element_type=jnp.float32)           # (TN, dm) f32

    # per-head softmax over d_head channels without any 32-lane slicing:
    #  - subtract the global row max (constant within every head group -> exact softmax),
    #  - exp in f32, per-head denominators via one block-diag-of-ones MXU dot.
    q = q - jnp.max(q, axis=-1, keepdims=True)
    eq = jnp.exp(q)
    denom = jnp.dot(eq.astype(cd), blk_ones_ref[...],
                    preferred_element_type=jnp.float32)                        # (TN, dm)
    q_s = eq * pl.reciprocal(denom, approx=recip_approx)

    # Wlin + scale already folded into ctx2 -> single per-tile (TN,dm)x(dm,dm) MXU dot
    y = jnp.dot(q_s.astype(cd), ctx_ref[0].astype(cd),
                preferred_element_type=jnp.float32) + blin_ref[...]
    out_ref[0] = y.astype(out_ref.dtype)                                       # lane-dense store


# ---------------------------------------------------------------------------------------------
# Host-side helpers
# ---------------------------------------------------------------------------------------------
def split_kv_weight(wkv_t, n_heads, d_head):
    """Host-side (free) reorder of the interleaved PyTorch kv weight into [K_heads | V_heads]."""
    dq = wkv_t.shape[0]
    w = wkv_t.reshape(dq, n_heads, 2, d_head)              # per head: [k_block, v_block]
    wk = w[:, :, 0, :].reshape(dq, n_heads * d_head)
    wv = w[:, :, 1, :].reshape(dq, n_heads * d_head)
    return wk, wv


def _vmem_capacity_bytes():
    try:
        cap = int(getattr(pltpu.get_tpu_info(), "vmem_capacity_bytes", 0))
        if cap > 0:
            return cap
    except Exception:
        pass
    return 64 << 20   # conservative fallback (v7x physical per-core VMEM)


def attention_forward(x, wq_t, wk_t, wv_t, wlin_t, blin, *, n_heads, d_head,
                      cond=None, compute_dtype=jnp.float32, recip_approx=False,
                      out_dtype=None, seq_tile=512):
    if cond is None:
        cond = x                                           # self-attention (cond_dim == None)
    B, N, Dq = x.shape
    _, M, Dc = cond.shape
    d_model = n_heads * d_head
    scale = d_head ** (-0.5)
    out_dtype = out_dtype or x.dtype

    # block-diagonal head masks (host-side constants)
    head_id = jnp.arange(d_model) // d_head
    blk = (head_id[:, None] == head_id[None, :]).astype(jnp.float32)           # (dm, dm)
    blk_ones = blk.astype(compute_dtype)                   # q-softmax denominator dot
    blk_scale = blk * jnp.float32(scale)                   # ctx mask with the q-scale folded in

    wq_c = wq_t.astype(compute_dtype)
    wkv_c = jnp.concatenate([wk_t, wv_t], axis=1).astype(compute_dtype)        # (Dq, 2*dm)
    wlin_c = wlin_t.astype(compute_dtype)
    blin_f = jnp.asarray(blin, jnp.float32).reshape(1, d_model)

    # shrink the activation HBM streams on the fast path (softmax math stays f32 in-kernel)
    if jnp.dtype(compute_dtype) != jnp.dtype(jnp.float32):
        x = x.astype(compute_dtype)
        cond = cond.astype(compute_dtype)

    hard_cap = int(_vmem_capacity_bytes() * 3 // 4)        # derived, not a fixed 56 MiB clamp
    wb = jnp.dtype(compute_dtype).itemsize
    xb = jnp.dtype(x.dtype).itemsize
    ob = jnp.dtype(out_dtype).itemsize

    # ---------------- kernel 1: per-batch folded context ----------------
    ctx_block = (M * Dc * xb + Dc * 2 * d_model * wb + d_model * d_model * wb
                 + d_model * d_model * 4 + d_model * d_model * 4)
    ctx_interm = (6 * M * d_model + 3 * d_model * d_model) * 4                 # k, v, ek, k_s, ...
    ctx_vmem = int(min(hard_cap, max(32 << 20, 2 * ctx_block + ctx_interm + (4 << 20))))

    ctx2 = pl.pallas_call(
        functools.partial(_ctx_kernel, d_model=d_model, recip_approx=recip_approx),
        out_shape=jax.ShapeDtypeStruct((B, d_model, d_model), jnp.float32),
        grid=(B,),
        in_specs=[
            pl.BlockSpec((1, M, Dc), lambda b: (b, 0, 0)),            # cond (full k/v sequence)
            pl.BlockSpec((Dc, 2 * d_model), lambda b: (0, 0)),        # fused wkv
            pl.BlockSpec((d_model, d_model), lambda b: (0, 0)),       # wlin
            pl.BlockSpec((d_model, d_model), lambda b: (0, 0)),       # block-diag * scale (f32)
        ],
        out_specs=pl.BlockSpec((1, d_model, d_model), lambda b: (b, 0, 0)),
        compiler_params=pltpu.CompilerParams(
            dimension_semantics=("parallel",),
            vmem_limit_bytes=ctx_vmem),
    )(cond, wkv_c, wlin_c, blk_scale)

    # ---------------- kernel 2: q-side, both grid axes parallel ----------------
    tn = N if N <= seq_tile else seq_tile                  # fixed tile; ragged last block OK
    num_tiles = pl.cdiv(N, tn)
    q_block = (tn * Dq * xb + Dq * d_model * wb + d_model * d_model * wb
               + d_model * d_model * 4 + d_model * 4 + tn * d_model * ob)
    q_interm = (5 * tn * d_model + d_model * d_model) * 4
    q_vmem = int(min(hard_cap, max(32 << 20, 2 * q_block + q_interm + (4 << 20))))

    out = pl.pallas_call(
        functools.partial(_attn_kernel, recip_approx=recip_approx),
        out_shape=jax.ShapeDtypeStruct((B, N, d_model), out_dtype),
        grid=(B, num_tiles),
        in_specs=[
            pl.BlockSpec((1, tn, Dq), lambda b, t: (b, t, 0)),        # x q-tile
            pl.BlockSpec((Dq, d_model), lambda b, t: (0, 0)),         # wq
            pl.BlockSpec((d_model, d_model), lambda b, t: (0, 0)),    # block-diag ones
            pl.BlockSpec((1, d_model, d_model), lambda b, t: (b, 0, 0)),  # folded ctx2 (f32)
            pl.BlockSpec((1, d_model), lambda b, t: (0, 0)),          # blin
        ],
        out_specs=pl.BlockSpec((1, tn, d_model), lambda b, t: (b, t, 0)),
        compiler_params=pltpu.CompilerParams(
            dimension_semantics=("parallel", "parallel"),             # no cross-step state
            vmem_limit_bytes=q_vmem),
    )(x, wq_c, blk_ones, ctx2, blin_f)
    return out


def reference_forward(x, wq_t, wkv_t, wlin_t, blin, *, n_heads, d_head):
    """Pure-JAX f32 mirror of the PyTorch module (interleaved kv weight, mask=None)."""
    B, N, _ = x.shape
    d_model = n_heads * d_head
    scale = d_head ** (-0.5)
    q = x @ wq_t
    kv = x @ wkv_t
    q = q.reshape(B, N, n_heads, d_head).transpose(0, 2, 1, 3)
    kv = kv.reshape(B, N, n_heads, 2 * d_head).transpose(0, 2, 1, 3)
    k, v = kv[..., :d_head], kv[..., d_head:]
    q = jax.nn.softmax(q, axis=-1) * scale
    k = jax.nn.softmax(k, axis=-2)
    ctx = jnp.einsum("bhnd,bhne->bhde", k, v)
    out = jnp.einsum("bhnd,bhde->bhne", q, ctx)
    out = out.transpose(0, 2, 1, 3).reshape(B, N, d_model)
    return out @ wlin_t + jnp.asarray(blin).reshape(1, d_model)


if __name__ == "__main__":
    # small shapes consistent with the module (d_model kept at one 128-lane vreg width)
    B, N, query_dim = 2, 8, 32
    n_heads, d_head = 4, 32
    d_model = n_heads * d_head

    key = jax.random.PRNGKey(0)
    kx, kq, kkv, klin, kb = jax.random.split(key, 5)

    x = jax.random.uniform(kx, (B, N, query_dim), dtype=jnp.float32)

    # nn.Linear-style deterministic init (uniform +-1/sqrt(fan_in)), stored pre-transposed (in, out)
    bound_q = 1.0 / (query_dim ** 0.5)
    wq_t = jax.random.uniform(kq, (query_dim, d_model), minval=-bound_q, maxval=bound_q,
                              dtype=jnp.float32)
    wkv_t = jax.random.uniform(kkv, (query_dim, 2 * d_model), minval=-bound_q, maxval=bound_q,
                               dtype=jnp.float32)
    wk_t, wv_t = split_kv_weight(wkv_t, n_heads, d_head)   # host-side column reorder (free)

    # case 1: module as shipped -> zero_module(lin) means the output is exactly the zero bias
    wlin0 = jnp.zeros((d_model, d_model), jnp.float32)
    blin0 = jnp.zeros((1, d_model), jnp.float32)
    out0 = attention_forward(x, wq_t, wk_t, wv_t, wlin0, blin0, n_heads=n_heads, d_head=d_head,
                             compute_dtype=jnp.float32, recip_approx=False)
    jax.block_until_ready(out0)
    assert jnp.allclose(out0, 0.0), "zero-initialized output projection must give zeros"

    # case 2: non-zero lin weights (post-training) validate the full math path, f32 MXU operands
    bound_l = 1.0 / (d_model ** 0.5)
    wlin_t = jax.random.uniform(klin, (d_model, d_model), minval=-bound_l, maxval=bound_l,
                                dtype=jnp.float32)
    blin = jax.random.uniform(kb, (1, d_model), minval=-bound_l, maxval=bound_l,
                              dtype=jnp.float32)
    out_ref = reference_forward(x, wq_t, wkv_t, wlin_t, blin, n_heads=n_heads, d_head=d_head)

    out_f32 = attention_forward(x, wq_t, wk_t, wv_t, wlin_t, blin, n_heads=n_heads, d_head=d_head,
                                compute_dtype=jnp.float32, recip_approx=False)
    jax.block_until_ready(out_f32)
    assert jnp.allclose(out_f32, out_ref, atol=1e-4, rtol=1e-4), "f32 kernel mismatch"

    # case 3: fast path (bf16 x / weights / output + approximate EUP reciprocal), loose tolerance
    out_bf16 = attention_forward(x, wq_t, wk_t, wv_t, wlin_t, blin, n_heads=n_heads, d_head=d_head,
                                 compute_dtype=jnp.bfloat16, recip_approx=True,
                                 out_dtype=jnp.bfloat16)
    jax.block_until_ready(out_bf16)
    assert jnp.allclose(out_bf16.astype(jnp.float32), out_ref, atol=5e-2, rtol=5e-2), \
        "bf16 kernel mismatch"

    print("KERNEL_OK")
</pallas_src>

<mosaic_0001>
module attributes {stable_mosaic.version = 11 : i64} {
  func.func @_ctx_kernel(%arg0: i32, %arg1: memref<1x8x32xf32, #tpu.memory_space<vmem>>, %arg2: memref<32x256xf32, #tpu.memory_space<vmem>>, %arg3: memref<128x128xf32, #tpu.memory_space<vmem>>, %arg4: memref<128x128xf32, #tpu.memory_space<vmem>>, %arg5: memref<1x128x128xf32, #tpu.memory_space<vmem>>) attributes {dimension_semantics = [#tpu.dimension_semantics<parallel>], iteration_bounds = array<i64: 2>, scalar_prefetch = 0 : i64, scratch_operands = 0 : i64, tpu.core_type = #tpu.core_type<tc>, window_params = [{transform_indices = @transform_0, window_bounds = array<i64: 1, 8, 32>}, {pipeline_mode = #tpu.pipeline_mode<synchronous>, transform_indices = @transform_1, window_bounds = array<i64: 32, 256>}, {pipeline_mode = #tpu.pipeline_mode<synchronous>, transform_indices = @transform_2, window_bounds = array<i64: 128, 128>}, {pipeline_mode = #tpu.pipeline_mode<synchronous>, transform_indices = @transform_3, window_bounds = array<i64: 128, 128>}, {transform_indices = @transform_4, window_bounds = array<i64: 1, 128, 128>}]} {
    %c0 = arith.constant 0 : index
    %c0_0 = arith.constant 0 : index
    %c0_1 = arith.constant 0 : index
    %0 = vector.load %arg1[%c0, %c0_0, %c0_1] : memref<1x8x32xf32, #tpu.memory_space<vmem>>, vector<1x8x32xf32>
    %1 = vector.shape_cast %0 : vector<1x8x32xf32> to vector<8x32xf32>
    %c0_2 = arith.constant 0 : index
    %c0_3 = arith.constant 0 : index
    %2 = vector.load %arg2[%c0_2, %c0_3] : memref<32x256xf32, #tpu.memory_space<vmem>>, vector<32x256xf32>
    %cst = arith.constant dense<0.000000e+00> : vector<8x256xf32>
    %3 = tpu.matmul %1, %2, %cst {dimension_numbers = #tpu.dot_dimension_numbers<[1], [0], [0], [1], [0, 0, 1, 1], [], []>} : vector<8x32xf32>, vector<32x256xf32>, vector<8x256xf32> -> vector<8x256xf32>
    %4 = vector.extract_strided_slice %3 {offsets = [0, 0], sizes = [8, 128], strides = [1, 1]} : vector<8x256xf32> to vector<8x128xf32>
    %5 = vector.extract_strided_slice %3 {offsets = [0, 128], sizes = [8, 128], strides = [1, 1]} : vector<8x256xf32> to vector<8x128xf32>
    %cst_4 = arith.constant dense<0xFF800000> : vector<128xf32>
    %6 = vector.multi_reduction <maximumf>, %4, %cst_4 [0] : vector<8x128xf32> to vector<128xf32>
    %7 = vector.shape_cast %6 : vector<128xf32> to vector<1x128xf32>
    %8 = vector.broadcast %7 : vector<1x128xf32> to vector<8x128xf32>
    %9 = arith.subf %4, %8 : vector<8x128xf32>
    %10 = math.exp %9 : vector<8x128xf32>
    %cst_5 = arith.constant dense<0.000000e+00> : vector<128xf32>
    %11 = vector.multi_reduction <add>, %10, %cst_5 [0] : vector<8x128xf32> to vector<128xf32>
    %12 = vector.shape_cast %11 : vector<128xf32> to vector<1x128xf32>
    %13 = tpu.reciprocal %12 : vector<1x128xf32> -> vector<1x128xf32>
    %14 = vector.broadcast %13 : vector<1x128xf32> to vector<8x128xf32>
    %15 = arith.mulf %10, %14 : vector<8x128xf32>
    %16 = tpu.transpose %15, [1, 0] : vector<8x128xf32> -> vector<128x8xf32>
    %cst_6 = arith.constant dense<0.000000e+00> : vector<128x128xf32>
    %17 = tpu.matmul %16, %5, %cst_6 {dimension_numbers = #tpu.dot_dimension_numbers<[1], [0], [0], [1], [0, 0, 1, 1], [], []>} : vector<128x8xf32>, vector<8x128xf32>, vector<128x128xf32> -> vector<128x128xf32>
    %c0_7 = arith.constant 0 : index
    %c0_8 = arith.constant 0 : index
    %18 = vector.load %arg4[%c0_7, %c0_8] : memref<128x128xf32, #tpu.memory_space<vmem>>, vector<128x128xf32>
    %19 = arith.mulf %17, %18 : vector<128x128xf32>
    %c0_9 = arith.constant 0 : index
    %c0_10 = arith.constant 0 : index
    %20 = vector.load %arg3[%c0_9, %c0_10] : memref<128x128xf32, #tpu.memory_space<vmem>>, vector<128x128xf32>
    %cst_11 = arith.constant dense<0.000000e+00> : vector<128x128xf32>
    %21 = tpu.matmul %19, %20, %cst_11 {dimension_numbers = #tpu.dot_dimension_numbers<[1], [0], [0], [1], [0, 0, 1, 1], [], []>} : vector<128x128xf32>, vector<128x128xf32>, vector<128x128xf32> -> vector<128x128xf32>
    %c0_12 = arith.constant 0 : index
    %c0_13 = arith.constant 0 : index
    %c0_14 = arith.constant 0 : index
    %22 = vector.load %arg5[%c0_12, %c0_13, %c0_14] : memref<1x128x128xf32, #tpu.memory_space<vmem>>, vector<1x128x128xf32>
    %23 = vector.shape_cast %22 : vector<1x128x128xf32> to vector<128x128xf32>
    %24 = vector.shape_cast %21 : vector<128x128xf32> to vector<1x128x128xf32>
    tpu.vector_store %arg5[%c0_12, %c0_13, %c0_14], %24 {strides = array<i32>} : memref<1x128x128xf32, #tpu.memory_space<vmem>>, vector<1x128x128xf32>,
    return
  }
  func.func @transform_0(%arg0: i32) -> (i32, i32, i32) {
    %c0_i32 = arith.constant 0 : i32
    %c0_i32_0 = arith.constant 0 : i32
    %c0_i32_1 = arith.constant 0 : i32
    return %arg0, %c0_i32, %c0_i32_0 : i32, i32, i32
  }
  func.func @transform_1(%arg0: i32) -> (i32, i32) {
    %c0_i32 = arith.constant 0 : i32
    %c0_i32_0 = arith.constant 0 : i32
    %c0_i32_1 = arith.constant 0 : i32
    return %c0_i32, %c0_i32_0 : i32, i32
  }
  func.func @transform_2(%arg0: i32) -> (i32, i32) {
    %c0_i32 = arith.constant 0 : i32
    %c0_i32_0 = arith.constant 0 : i32
    %c0_i32_1 = arith.constant 0 : i32
    return %c0_i32, %c0_i32_0 : i32, i32
  }
  func.func @transform_3(%arg0: i32) -> (i32, i32) {
    %c0_i32 = arith.constant 0 : i32
    %c0_i32_0 = arith.constant 0 : i32
    %c0_i32_1 = arith.constant 0 : i32
    return %c0_i32, %c0_i32_0 : i32, i32
  }
  func.func @transform_4(%arg0: i32) -> (i32, i32, i32) {
    %c0_i32 = arith.constant 0 : i32
    %c0_i32_0 = arith.constant 0 : i32
    %c0_i32_1 = arith.constant 0 : i32
    return %arg0, %c0_i32, %c0_i32_0 : i32, i32, i32
  }
}

</mosaic_0001>

<bundles_post_ra>
// kernel: tpu_custom_call.1
= control target key start
LH: loop header
LB: loop body
LE: loop exit
PB: predicated region body
PF: predicated region fallthrough
CT: control target
= control target key end

     0   :  { %9 = vsyncpa [#allocation3], 0  ;;  %s1737_s0 = inlined_call_operand.hbm [shape: f32[2,8,32], index: 0, kind: input, shape index: {}]   ;;  %s1738_s1 = inlined_call_operand.hbm [shape: f32[32,256], index: 1, kind: input, shape index: {}]   ;;  %s1739_s2 = inlined_call_operand.hbm [shape: f32[128,128], index: 2, kind: input, shape index: {}]   ;;  %s1740_s3 = inlined_call_operand.hbm [shape: f32[128,128], index: 3, kind: input, shape index: {}]   ;;  %s1741_s4 = inlined_call_operand.hbm [shape: f32[2,128,128], index: 4, kind: output, shape index: {}]  }
   0x1   :  { %11 = vsyncpa [#allocation3 + $0x1], 0 }
   0x2   :  { %12 = vsyncpa [#allocation6], 0 }
   0x3   :  { %13 = vsyncpa [#allocation9], 0 }
   0x4   :  { %14 = vsyncpa [#allocation4], 0 }
   0x5   :  { %16 = vsyncpa [#allocation4 + $0x1], 0  ;;  %s1448_s15 = smov 0   ;;  %s1450_s16 = smov 0  }
   0x6   :  { %s1452_s17 = smov 0   ;;  %s1454_s18 = smov 0  }
   0x7 LB: > { %s1469_s19 = sadd.s32 4294967295, %s1409_s18   ;;  %s909_s20 = sadd.s32 4294967294, %s1409_s18   ;;  %s1409_s18 = sphi %s1454_s18, %s1764_s18   ;;  %s1405_s17 = sphi %s1452_s17, %s1763_s17   ;;  %s1401_s16 = sphi %s1450_s16, %s1762_s16   ;;  %s1397_s15 = sphi %s1448_s15, %s1761_s15  }
   0x8   : > { %p42_p0 = scmp.ne.s32.totalorder %s1401_s16, %s1397_s15  ;;  %p1742_p1 = scmp.eq.s32.totalorder %s1469_s19, 0 }
   0x9   : > { %p135_p3 = scmp.eq.s32.totalorder %s909_s20, 1  ;;  %p910_p5 = scmp.ge.s32.totalorder %s1409_s18, 1 }
   0xa   : > { %p1478_p4 = por %p1742_p1, %p42_p0  ;;  %p142_p7 = scmp.lt.s32.totalorder %s1409_s18, 3 }
   0xb   : > { %p1483_p6 = por %p135_p3, %p42_p0  ;;  %s1411_s24 = smov [#allocation5]  }
   0xc   : > { %s1745_s21 = scalar_select %p1478_p4, 1, 0 }
   0xd   : > { %s1746_s22 = scalar_select %p1483_p6, 1, 0 }
   0xe   : > { %p1488_p8 = pnand %p910_p5, %p142_p7  ;;  %s154_s25 = sshll.u32 %s1411_s24, 4  ;;  %s1492_s25 = int_to_ptr.vmem [resolvable:$true] %s154_s25 }
   0xf   : > { %s1412_s27 = smov [#allocation7]   ;;  %s1221_s5 = scalar_lea.hbm %s1738_s1, 1024 }
  0x10   : > { %s1747_s23 = scalar_select %p1488_p8, 1, 0 }
  0x11   : > { %p1149_p9 = pneg %p1488_p8  ;;  %s167_s28 = sshll.u32 %s1412_s27, 4  ;;  %s1503_s28 = int_to_ptr.vmem [resolvable:$true] %s167_s28 }
  0x12   : > { %p1222_p12 = scmp.ne.s32.totalorder %s1738_s1, %s1221_s5  ;;  %p1228_p5 = scmp.lt.u32.totalorder %s1221_s5, %s1738_s1 }
  0x13   : > { %p1499_p11 = pnand %p1149_p9, %p1742_p1 }
  0x15   : > { %p1513_p13 = pneg %p1499_p11 }
  0x17   : > { %p1224_p0 = pnand %p1513_p13, %p1222_p12 }
  0x19   : > { %p1225_p3 = pneg %p1224_p0 }
  0x1b   : > { %p1230_p7 = pnand %p1228_p5, %p1225_p3 }
  0x1d   : > { %1233 = shalt.err (!%p1230_p7)
}
  0x1e   : > { %s1234_s11 = scalar_lea.vmem %s1492_s25, 1024  ;;  %p1242_p2 = scmp.lt.s32.totalorder %s1492_s25, %s1492_s25 }
  0x1f   : > { %p1235_p9 = scmp.ne.s32.totalorder %s1492_s25, %s1234_s11  ;;  %p1243_p6 = scmp.lt.s32.totalorder %s1234_s11, %s1234_s11 }
  0x21   : > { %p1237_p10 = pnand %p1235_p9, %p1513_p13  ;;  %p1244_p12 = por %p1243_p6, %p1242_p2 }
  0x23   : > { %p1238_p1 = pneg %p1237_p10 }
  0x25   : > { %p1245_p0 = pnand %p1244_p12, %p1238_p1 }
  0x27   : > { %1248 = shalt.err (!%p1245_p0)
}
  0x28   : > { %s1413_s12 = smov 256   ;;  %s1414_s13 = smov 16  }
  0x29   : > { %1152 = dma.hbm_to_vmem [thread:$0]  (!%p1499_p11), %s1738_s1, 1024, %s1492_s25, [#allocation6], %s1413_s12, %s1413_s12, %s1414_s13  }
  0x2a   : > { %s1249_s29 = scalar_lea.hbm %s1739_s2, 2048 }
  0x2b   : > { %p1250_p2 = scmp.ne.s32.totalorder %s1739_s2, %s1249_s29  ;;  %p1256_p10 = scmp.lt.u32.totalorder %s1249_s29, %s1739_s2 }
  0x2d   : > { %p1252_p1 = pnand %p1250_p2, %p1513_p13 }
  0x2f   : > { %p1253_p6 = pneg %p1252_p1 }
  0x31   : > { %p1258_p3 = pnand %p1256_p10, %p1253_p6 }
  0x33   : > { %1261 = shalt.err (!%p1258_p3)
}
  0x34   : > { %s1262_s25 = scalar_lea.vmem %s1503_s28, 2048  ;;  %p1270_p12 = scmp.lt.s32.totalorder %s1503_s28, %s1503_s28 }
  0x35   : > { %p1263_p5 = scmp.ne.s32.totalorder %s1503_s28, %s1262_s25  ;;  %p1271_p0 = scmp.lt.s32.totalorder %s1262_s25, %s1262_s25 }
  0x37   : > { %p1265_p7 = pnand %p1263_p5, %p1513_p13  ;;  %p1272_p2 = por %p1271_p0, %p1270_p12 }
  0x39   : > { %p1266_p9 = pneg %p1265_p7 }
  0x3b   : > { %p1273_p1 = pnand %p1272_p2, %p1266_p9 }
  0x3d   : > { %1276 = shalt.err (!%p1273_p1)
}
  0x3e   : > { %s1415_s9 = smov 128   ;;  %s1416_s10 = smov 8  }
  0x3f   : > { %1155 = dma.hbm_to_vmem [thread:$0]  (!%p1499_p11), %s1739_s2, 2048, %s1503_s28, [#allocation6], %s1415_s9, %s1415_s9, %s1416_s10  }
  0x40   : > { %s1417_s13 = smov [#allocation8]   ;;  %s1558_s20 = sadd.s32 1, %s1409_s18  }
  0x41   : > { %s180_s14 = sshll.u32 %s1417_s13, 4  ;;  %s1277_s29 = scalar_lea.hbm %s1740_s3, 2048  ;;  %s181_s14 = int_to_ptr.vmem [resolvable:$true] %s180_s14 }
  0x42   : > { %p1278_p6 = scmp.ne.s32.totalorder %s1740_s3, %s1277_s29  ;;  %p1284_p5 = scmp.lt.u32.totalorder %s1277_s29, %s1740_s3 }
  0x44   : > { %p1280_p10 = pnand %p1278_p6, %p1513_p13 }
  0x46   : > { %p1281_p3 = pneg %p1280_p10 }
  0x48   : > { %p1286_p7 = pnand %p1284_p5, %p1281_p3 }
  0x4a   : > { %1289 = shalt.err (!%p1286_p7)
}
  0x4b   : > { %s1290_s28 = scalar_lea.vmem %s181_s14, 2048  ;;  %p1298_p2 = scmp.lt.s32.totalorder %s181_s14, %s181_s14 }
  0x4c   : > { %p1291_p9 = scmp.ne.s32.totalorder %s181_s14, %s1290_s28  ;;  %p1299_p1 = scmp.lt.s32.totalorder %s1290_s28, %s1290_s28 }
  0x4e   : > { %p1293_p12 = pnand %p1291_p9, %p1513_p13  ;;  %p1300_p4 = por %p1299_p1, %p1298_p2 }
  0x50   : > { %p1294_p0 = pneg %p1293_p12 }
  0x52   : > { %p1301_p8 = pnand %p1300_p4, %p1294_p0 }
  0x54   : > { %1304 = shalt.err (!%p1301_p8)
}
  0x55   : > { %1158 = dma.hbm_to_vmem [thread:$0]  (!%p1499_p11), %s1740_s3, 2048, %s181_s14, [#allocation9], %s1415_s9, %s1415_s9, %s1416_s10  }
  0x56   : > { %s26_s8 = ssub.s32 %s1409_s18, %s1558_s20  ;;  %s29_s12 = sadd.s32 1, %s1405_s17 }
  0x57   : > { %p27_p4 = scmp.eq.s32.totalorder %s26_s8, 0  ;;  %p36_p8 = scmp.ne.s32.totalorder %s1405_s17, %s1401_s16 }
  0x58   : > { %p37_p13 = scmp.eq.s32.totalorder %s1409_s18, 0  ;;  %p1170_p6 = scmp.lt.s32.totalorder %s1409_s18, 2 }
  0x59   : > { %s1586_s26 = scalar_select %p27_p4, %s1405_s17, %s29_s12  }
  0x5a   : > { %p38_p10 = por %p37_p13, %p36_p8  ;;  %p1750_p3 = scmp.eq.s32.totalorder %s1469_s19, 1 }
  0x5b   : > { %s194_s24 = sand.u32 1, %s1405_s17   ;;  %s916_s27 = sshll.u32 %s1409_s18, 7 }
  0x5c   : > { %p1590_p5 = por %p1750_p3, %p36_p8  ;;  %s915_s29 = sshll.u32 %s194_s24, 3 }
  0x5d   : > { %s1599_s9 = scalar_lea.hbm %s1737_s0, %s916_s27  ;;  %s198_s10 = scalar_lea.vmem [#allocation2], %s915_s29 }
  0x5e   : > { %s205_s14 = sshll.u32 %s198_s10, 4  ;;  %p1601_p11 = pnand %p1170_p6, %p38_p10  ;;  %s1605_s14 = int_to_ptr.vmem [resolvable:$true] %s205_s14 }
  0x5f   : > { %s195_s7 = scalar_lea.sflag [#allocation3], %s194_s24  ;;  %s1305_s28 = scalar_lea.hbm %s1599_s9, 128 }
  0x60   : > { %p1306_p7 = scmp.ne.s32.totalorder %s1599_s9, %s1305_s28  ;;  %p1307_p9 = pneg %p1601_p11 }
  0x61   : > { %s1310_s8 = scalar_lea.hbm %s1737_s0, 256  ;;  %p1311_p2 = scmp.lt.u32.totalorder %s1599_s9, %s1737_s0 }
  0x62   : > { %p1308_p12 = pnand %p1307_p9, %p1306_p7  ;;  %p1312_p1 = scmp.lt.u32.totalorder %s1310_s8, %s1305_s28 }
  0x63   : > { %p1314_p8 = scmp.lt.u32.totalorder %s1305_s28, %s1599_s9 }
  0x64   : > { %p1309_p0 = pneg %p1308_p12  ;;  %p1313_p4 = por %p1312_p1, %p1311_p2 }
  0x66   : > { %p1315_p13 = por %p1314_p8, %p1313_p4 }
  0x68   : > { %p1316_p6 = pnand %p1315_p13, %p1309_p0 }
  0x6a   : > { %1319 = shalt.err (!%p1316_p6)
}
  0x6b   : > { %s1320_s24 = scalar_lea.vmem %s1605_s14, 128  ;;  %s1418_s29 = smov [#allocation2]  }
  0x6c   : > { %p1321_p10 = scmp.ne.s32.totalorder %s1605_s14, %s1320_s24  ;;  %s1325_s30 = sshll.u32 %s1418_s29, 4  ;;  %s1326_s30 = int_to_ptr.vmem [resolvable:$false] %s1325_s30 }
  0x6d   : > { %s1327_s5 = scalar_lea.vmem %s1326_s30, 256  ;;  %p1328_p12 = scmp.lt.s32.totalorder %s1605_s14, %s1326_s30 }
  0x6e   : > { %p1323_p3 = pnand %p1321_p10, %p1307_p9  ;;  %p1329_p2 = scmp.lt.s32.totalorder %s1327_s5, %s1320_s24 }
  0x70   : > { %p1324_p7 = pneg %p1323_p3  ;;  %p1330_p1 = por %p1329_p2, %p1328_p12 }
  0x72   : > { %p1331_p4 = pnand %p1330_p1, %p1324_p7 }
  0x74   : > { %1334 = shalt.err (!%p1331_p4)
}
  0x75   : > { %1162 = dma.hbm_to_vmem [thread:$0]  (!%p1601_p11), %s1599_s9, 128, %s1605_s14, %s195_s7  }
  0x76   : > { %p1753_p0 = scmp.ne.s32.totalorder %s1747_s23, 0 }
  0x77   : > { %s1635_s10 = sand.u32 (!%p1753_p0), 1, %s1401_s16   ;;  %p1754_p9 = scmp.ne.s32.totalorder (!%p1753_p0), %s1745_s21, 0 }
  0x78   : > { %214 = sbr.rel (%p1753_p0) target bundleno = 1042 (0x412), region = 36  ;;  %s918_s28 = sshll.u32 (!%p1753_p0), %s1635_s10, 3 }
  0x79   : > { %s217_s25 = scalar_lea.sflag (!%p1753_p0), [#allocation3], %s1635_s10  ;;  %s220_s11 = scalar_lea.vmem (!%p1753_p0), [#allocation2], %s918_s28 }
  0x7f   : > { %1380 = dma.done.wait (%p1754_p9), %s217_s25, 128  }
  0x80   : > { %1382 = vsyncadd (%p1754_p9), %s217_s25, 4294967168  ;;  %p1755_p8 = scmp.eq.s32.totalorder %s1469_s19, 0 }
  0x82   : > { %1384 = dma.done.wait (%p1755_p8), [#allocation6], 3072   ;;  %p1756_p11 = pmov %p1755_p8 }
  0x83   : > { %p1757_p13 = pmov %p1755_p8 }
  0x84   : > { %1386 = vsyncadd (%p1756_p11), [#allocation6], 4294964224 }
  0x85   : > { %1388 = dma.done.wait (%p1757_p13), [#allocation9], 2048   ;;  %p1758_p6 = pmov %p1755_p8 }
  0x86   : > { %v1419_v0 = vmov 0.0   ;;  %v259_v1 = vld [vmem:[#allocation5 + $0x8] sm:$0xff]  ;;  %v261_v2 = vld [vmem:[#allocation5 + $0x18] sm:$0xff]  ;;  %v258_v3 = vld [vmem:[#allocation5] sm:$0xff]  ;;  %vm266_vm0 = vcmask 261120   ;;  %vm390_vm1 = vcmask 64512  }
  0x87   : > { %1390 = vsyncadd (%p1758_p6), [#allocation9], 4294965248  ;;  %334 = vmatprep.mubr.f32.mxu0 %v1419_v0  ;;  %v1077_v4 = vpack.c.bf16 %v261_v2, %v259_v1  ;;  %v260_v5 = vld [vmem:[#allocation5 + $0x10] sm:$0xff]  ;;  %v263_v6 = vld [vmem:[#allocation5 + $0x28] sm:$0xff]  ;;  %s922_s21 = sshll.u32 %s1635_s10, 7  ;;  %s945_s9 = sshll.u32 %s1469_s19, 11 }
  0x88   : > { %v265_v7 = vld [vmem:[#allocation5 + $0x38] sm:$0xff]  ;;  %v1079_v8 = vpack.c.bf16 %v260_v5, %v258_v3  ;;  %v262_v10 = vld [vmem:[#allocation5 + $0x20] sm:$0xff]  ;;  %v264_v11 = vld [vmem:[#allocation5 + $0x30] sm:$0xff]  ;;  %s1668_s23 = scalar_lea.vmem [#allocation10], %s922_s21  ;;  %s1689_s8 = scalar_lea.hbm %s1741_s4, %s945_s9 }
  0x89   : > { %v1081_v9 = vpack.c.bf16 %v265_v7, %v263_v6  ;;  %1078 = vmatprep.subr.bf16.mxu0 %v1077_v4  ;;  %v1083_v12 = vpack.c.bf16 %v264_v11, %v262_v10  ;;  %v257_v13 = vld [vmem:[%s220_s11] sm:$0xff]  ;;  %v616_v33 = vld [vmem:[#allocation7] sm:$0xff]  ;;  %v617_v34 = vld [vmem:[#allocation7 + $0x8] sm:$0xff]  ;;  %s807_s14 = sshll.u32 %s1668_s23, 4  ;;  %s794_s12 = scalar_lea.sflag [#allocation4], %s1635_s10  ;;  %s1691_s14 = int_to_ptr.vmem [resolvable:$true] %s807_s14 }
  0x8a   : > { %1080 = vmatpush1.bf16.msra.mxu0 %v1079_v8  ;;  %v618_v35 = vld [vmem:[#allocation7 + $0x10] sm:$0xff]  ;;  %v1085_v36 = vpack.c.bf16 %v617_v34, %v616_v33  ;;  %v619_v37 = vld [vmem:[#allocation7 + $0x18] sm:$0xff]  ;;  %v620_v39 = vld [vmem:[#allocation7 + $0x20] sm:$0xff]  ;;  %s1335_s27 = scalar_lea.vmem %s1691_s14, 2048  ;;  %s1420_s19 = smov [#allocation10]  }
  0x8b   : > { %1082 = vmatprep.subr.bf16.mxu0 %v1081_v9  ;;  %v1089_v38 = vpack.c.bf16 %v619_v37, %v618_v35  ;;  %v621_v40 = vld [vmem:[#allocation7 + $0x28] sm:$0xff]  ;;  %v622_v42 = vld [vmem:[#allocation7 + $0x30] sm:$0xff]  ;;  %v623_v43 = vld [vmem:[#allocation7 + $0x38] sm:$0xff]  ;;  %p1336_p10 = scmp.ne.s32.totalorder %s1691_s14, %s1335_s27  ;;  %s1339_s24 = sshll.u32 %s1420_s19, 4  ;;  %s1340_s24 = int_to_ptr.vmem [resolvable:$false] %s1339_s24 }
  0x8c   : > { %v1093_v41 = vpack.c.bf16 %v621_v40, %v620_v39  ;;  %v1097_v44 = vpack.c.bf16 %v623_v43, %v622_v42  ;;  %v624_v45 = vld [vmem:[#allocation7 + $0x40] sm:$0xff]  ;;  %v625_v46 = vld [vmem:[#allocation7 + $0x48] sm:$0xff]  ;;  %v626_v48 = vld [vmem:[#allocation7 + $0x50] sm:$0xff]  ;;  %s1341_s29 = scalar_lea.vmem %s1340_s24, 4096  ;;  %p1342_p12 = scmp.lt.s32.totalorder %s1691_s14, %s1340_s24 }
  0x8d   : > { %v1101_v47 = vpack.c.bf16 %v625_v46, %v624_v45  ;;  %v627_v49 = vld [vmem:[#allocation7 + $0x58] sm:$0xff]  ;;  %v628_v51 = vld [vmem:[#allocation7 + $0x60] sm:$0xff]  ;;  %v629_v52 = vld [vmem:[#allocation7 + $0x68] sm:$0xff]  ;;  %p1337_p3 = pnand %p1336_p10, %p1590_p5  ;;  %p1343_p2 = scmp.lt.s32.totalorder %s1341_s29, %s1335_s27 }
  0x8e   : > { %1084 = vmatpush1.bf16.msra.mxu0 %v1083_v12  ;;  %v1105_v50 = vpack.c.bf16 %v627_v49, %v626_v48  ;;  %v1109_v53 = vpack.c.bf16 %v629_v52, %v628_v51  ;;  %v630_v6 = vld [vmem:[#allocation7 + $0x70] sm:$0xff]  ;;  %v631_v7 = vld [vmem:[#allocation7 + $0x78] sm:$0xff]  ;;  %v584_v9 = vld [vmem:[#allocation8] sm:$0xff] }
  0x8f   : > { %1086 = vmatprep.subr.bf16.mxu0 %v1085_v36  ;;  %v1113_v8 = vpack.c.bf16 %v631_v7, %v630_v6  ;;  %v585_v11 = vld [vmem:[#allocation8 + $0x8] sm:$0xff]  ;;  %v592_v33 = vld [vmem:[#allocation8 + $0x40] sm:$0xff]  ;;  %v594_v39 = vld [vmem:[#allocation8 + $0x50] sm:$0xff]  ;;  %p1338_p7 = pneg %p1337_p3  ;;  %p1344_p1 = por %p1343_p2, %p1342_p12 }
  0x90   : > { %v593_v35 = vld [vmem:[#allocation8 + $0x48] sm:$0xff]  ;;  %v596_v45 = vld [vmem:[#allocation8 + $0x60] sm:$0xff]  ;;  %v598_v51 = vld [vmem:[#allocation8 + $0x70] sm:$0xff] }
  0x91   : > { %923 = vmatmul.mubr.msk.f32.vlgmr.msra.gmra.mrb[0].mxu0 %vm266_vm0, %v257_v13  ;;  %p1345_p4 = pnand %p1344_p1, %p1338_p7 }
  0x92   : > { %1088 = vmatpush3.bf16.msra.mxu0 %v1085_v36 }
  0x93   : > { %1090 = vmatprep.subr.bf16.mxu0 %v1089_v38 }
  0x96   : > { %1092 = vmatpush3.bf16.msra.mxu0 %v1089_v38 }
  0x97   : > { %1094 = vmatprep.subr.bf16.mxu0 %v1093_v41 }
  0x9a   : > { %1096 = vmatpush3.bf16.msra.mxu0 %v1093_v41 }
  0x9b   : > { %1098 = vmatprep.subr.bf16.mxu0 %v1097_v44 }
  0x9e   : > { %1100 = vmatpush3.bf16.msra.mxu0 %v1097_v44 }
  0x9f   : > { %1102 = vmatprep.subr.bf16.mxu0 %v1101_v47 }
  0xa2   : > { %1104 = vmatpush3.bf16.msra.mxu0 %v1101_v47 }
  0xa3   : > { %1106 = vmatprep.subr.bf16.mxu0 %v1105_v50 }
  0xa6   : > { %1108 = vmatpush3.bf16.msra.mxu0 %v1105_v50 }
  0xa7   : > { %1110 = vmatprep.subr.bf16.mxu0 %v1109_v53 }
  0xaa   : > { %1112 = vmatpush3.bf16.msra.mxu0 %v1109_v53 }
  0xab   : > { %1114 = vmatprep.subr.bf16.mxu0 %v1113_v8 }
  0xae   : > { %1116 = vmatpush3.bf16.msra.mxu0 %v1113_v8 }
 0x164   : > { %v336_v14 = vpop.f32.mrb[0].mxu0 }
 0x165   : > { %v341_v15 = vrot.slane %v336_v14, 4  ;;  %v338_v16 = vpop.f32.mrb[1].mxu0 }
 0x166   : > { %995 = vmatprep.subr.mxu1 %v338_v16 }
 0x167   : > { %v342_v17 = vmax.f32 %v336_v14, %v341_v15  ;;  %996 = vmatpush3.msra.mxu1 %v338_v16  ;;  %v586_v15 = vld [vmem:[#allocation8 + $0x10] sm:$0xff] }
 0x168   : > { %1117 = vmatprep.subr.bf16.mxu1 %v1085_v36 }
 0x169   : > { %v343_v18 = vrot.slane %v342_v17, 2 }
 0x16b   : > { %v344_v19 = vmax.f32 %v342_v17, %v343_v18  ;;  %v587_v17 = vld [vmem:[#allocation8 + $0x18] sm:$0xff] }
 0x16d   : > { %v345_v20 = vrot.slane %v344_v19, 1 }
 0x16f   : > { %v346_v21 = vmax.f32 %v344_v19, %v345_v20 }
 0x171   : > { %v347_v22 = vsub.f32 %v336_v14, %v346_v21  ;;  %v588_v21 = vld [vmem:[#allocation8 + $0x20] sm:$0xff] }
 0x173   : > { %v348_v23 = vmul.f32 1.442695, %v347_v22 }
 0x175   : > { %1217 = vpow2.f32 %v348_v23  ;;  %v589_v23 = vld [vmem:[#allocation8 + $0x28] sm:$0xff] }
 0x17f   : > { %v1218_v24 = vpop.eup %1217 }
 0x180   : > { %v350_v25 = vrot.slane %v1218_v24, 4 }
 0x182   : > { %v351_v26 = vadd.f32 %v1218_v24, %v350_v25 }
 0x184   : > { %v352_v27 = vrot.slane %v351_v26, 2 }
 0x186   : > { %v353_v28 = vadd.f32 %v352_v27, %v351_v26  ;;  %v590_v27 = vld [vmem:[#allocation8 + $0x30] sm:$0xff] }
 0x188   : > { %v354_v29 = vrot.slane %v353_v28, 1 }
 0x18a   : > { %v355_v30 = vadd.f32 %v354_v29, %v353_v28  ;;  %v591_v29 = vld [vmem:[#allocation8 + $0x38] sm:$0xff] }
 0x18c   : > { %1219 = vrcp.f32 %v355_v30 }
 0x196   : > { %v1220_v31 = vpop.eup %1219 }
 0x197   : > { %v357_v32 = vmul.f32 %v1220_v31, %v1218_v24 }
 0x199   : > { %358 = vxpose.xlu0.b32.start.end [1/1] (short) %v357_v32, 128 }
 0x219   : > { %v374_v54 = vpop.trf.xlu0 }
 0x21a   : > { %997 = vmatprep.mubr.msk.f32.mxu1 %vm390_vm1, %v374_v54 }
 0x21d   : > { %v375_v55 = vpop.trf.xlu0 }
 0x21e   : > { %998 = vmatmul.mubr.msk.f32.vlgmr.msra.gmra.mrb[0].mxu1 %vm390_vm1, %v375_v55 }
 0x21f   : > { %1125 = vmatpush3.bf16.msra.mxu1 %v1085_v36 }
 0x220   : > { %1118 = vmatprep.subr.bf16.mxu1 %v1089_v38 }
 0x221   : > { %v376_v56 = vpop.trf.xlu0 }
 0x222   : > { %1000 = vmatprep.mubr.msk.f32.mxu1 %vm390_vm1, %v376_v56 }
 0x223   : > { %1126 = vmatpush3.bf16.msra.mxu1 %v1089_v38 }
 0x224   : > { %1119 = vmatprep.subr.bf16.mxu1 %v1093_v41 }
 0x225   : > { %v377_v57 = vpop.trf.xlu0 }
 0x226   : > { %1001 = vmatmul.mubr.msk.f32.gmra.mrb[2].mxu1 %vm390_vm1, %v377_v57 }
 0x227   : > { %1127 = vmatpush3.bf16.msra.mxu1 %v1093_v41  ;;  %v595_v41 = vld [vmem:[#allocation8 + $0x58] sm:$0xff] }
 0x228   : > { %1120 = vmatprep.subr.bf16.mxu1 %v1097_v44 }
 0x229   : > { %v378_v58 = vpop.trf.xlu0 }
 0x22a   : > { %1003 = vmatprep.mubr.msk.f32.mxu1 %vm390_vm1, %v378_v58 }
 0x22b   : > { %1128 = vmatpush3.bf16.msra.mxu1 %v1097_v44 }
 0x22c   : > { %1121 = vmatprep.subr.bf16.mxu1 %v1101_v47 }
 0x22d   : > { %v379_v59 = vpop.trf.xlu0 }
 0x22e   : > { %1004 = vmatmul.mubr.msk.f32.gmra.mrb[4].mxu1 %vm390_vm1, %v379_v59 }
 0x22f   : > { %1129 = vmatpush3.bf16.msra.mxu1 %v1101_v47  ;;  %v597_v47 = vld [vmem:[#allocation8 + $0x68] sm:$0xff] }
 0x230   : > { %1122 = vmatprep.subr.bf16.mxu1 %v1105_v50 }
 0x231   : > { %v380_v60 = vpop.trf.xlu0 }
 0x232   : > { %1006 = vmatprep.mubr.msk.f32.mxu1 %vm390_vm1, %v380_v60 }
 0x233   : > { %1130 = vmatpush3.bf16.msra.mxu1 %v1105_v50 }
 0x234   : > { %1123 = vmatprep.subr.bf16.mxu1 %v1109_v53 }
 0x235   : > { %v381_v61 = vpop.trf.xlu0 }
 0x236   : > { %1007 = vmatmul.mubr.msk.f32.gmra.mrb[6].mxu1 %vm390_vm1, %v381_v61 }
 0x237   : > { %1131 = vmatpush3.bf16.msra.mxu1 %v1109_v53  ;;  %v599_v53 = vld [vmem:[#allocation8 + $0x78] sm:$0xff] }
 0x238   : > { %1124 = vmatprep.subr.bf16.mxu1 %v1113_v8 }
 0x239   : > { %v382_v62 = vpop.trf.xlu0 }
 0x23a   : > { %1009 = vmatprep.mubr.msk.f32.mxu1 %vm390_vm1, %v382_v62 }
 0x23b   : > { %1132 = vmatpush3.bf16.msra.mxu1 %v1113_v8 }
 0x23d   : > { %v383_v63 = vpop.trf.xlu0 }
 0x23e   : > { %1010 = vmatmul.mubr.msk.f32.gmra.mrb[8].mxu1 %vm390_vm1, %v383_v63 }
 0x241   : > { %v384_v0 = vpop.trf.xlu0 }
 0x242   : > { %1012 = vmatprep.mubr.msk.f32.mxu1 %vm390_vm1, %v384_v0 }
 0x245   : > { %v385_v1 = vpop.trf.xlu0 }
 0x246   : > { %1013 = vmatmul.mubr.msk.f32.gmra.mrb[10].mxu1 %vm390_vm1, %v385_v1 }
 0x249   : > { %v386_v2 = vpop.trf.xlu0 }
 0x24a   : > { %1015 = vmatprep.mubr.msk.f32.mxu1 %vm390_vm1, %v386_v2 }
 0x24d   : > { %v387_v3 = vpop.trf.xlu0 }
 0x24e   : > { %1016 = vmatmul.mubr.msk.f32.gmra.mrb[12].mxu1 %vm390_vm1, %v387_v3 }
 0x251   : > { %v388_v4 = vpop.trf.xlu0 }
 0x252   : > { %1018 = vmatprep.mubr.msk.f32.mxu1 %vm390_vm1, %v388_v4 }
 0x255   : > { %v389_v5 = vpop.trf.xlu0 }
 0x256   : > { %1019 = vmatmul.mubr.msk.f32.gmra.mrb[14].mxu1 %vm390_vm1, %v389_v5 }
 0x2f1   : > { %v999_v10 = vpop.f32.mrb[0].mxu1 }
 0x2f2   : > { %v505_v12 = vpop.f32.mrb[1].mxu1  ;;  %v601_v14 = vmul.f32 %v999_v10, %v585_v11 }
 0x2f3   : > { %v600_v13 = vmul.f32 %v584_v9, %v505_v12 }
 0x2f5   : > { %1053 = vmatprep.mubr.f32.mxu0 %v600_v13 }
 0x2f6   : > { %1054 = vmatmul.mubr.f32.vlgmr.msra.gmra.mrb[2].mxu0 %v601_v14 }
 0x2f9   : > { %v1002_v16 = vpop.f32.mrb[2].mxu1 }
 0x2fa   : > { %v515_v18 = vpop.f32.mrb[3].mxu1  ;;  %v603_v20 = vmul.f32 %v1002_v16, %v587_v17 }
 0x2fb   : > { %v602_v19 = vmul.f32 %v586_v15, %v515_v18 }
 0x2fd   : > { %1056 = vmatprep.mubr.f32.mxu0 %v602_v19 }
 0x2fe   : > { %1057 = vmatmul.mubr.f32.gmra.mrb[4].mxu0 %v603_v20 }
 0x301   : > { %v1005_v22 = vpop.f32.mrb[4].mxu1 }
 0x302   : > { %v525_v24 = vpop.f32.mrb[5].mxu1  ;;  %v605_v26 = vmul.f32 %v1005_v22, %v589_v23 }
 0x303   : > { %v604_v25 = vmul.f32 %v588_v21, %v525_v24 }
 0x305   : > { %1059 = vmatprep.mubr.f32.mxu0 %v604_v25 }
 0x306   : > { %1060 = vmatmul.mubr.f32.gmra.mrb[6].mxu0 %v605_v26 }
 0x309   : > { %v1008_v28 = vpop.f32.mrb[6].mxu1 }
 0x30a   : > { %v535_v30 = vpop.f32.mrb[7].mxu1  ;;  %v607_v32 = vmul.f32 %v1008_v28, %v591_v29 }
 0x30b   : > { %v606_v31 = vmul.f32 %v590_v27, %v535_v30 }
 0x30d   : > { %1062 = vmatprep.mubr.f32.mxu1 %v606_v31 }
 0x30e   : > { %1063 = vmatmul.mubr.f32.vlgmr.msra.gmra.mrb[16].mxu1 %v607_v32 }
 0x311   : > { %v1011_v34 = vpop.f32.mrb[8].mxu1 }
 0x312   : > { %v545_v36 = vpop.f32.mrb[9].mxu1  ;;  %v609_v38 = vmul.f32 %v1011_v34, %v593_v35 }
 0x313   : > { %v608_v37 = vmul.f32 %v592_v33, %v545_v36 }
 0x315   : > { %1065 = vmatprep.mubr.f32.mxu1 %v608_v37 }
 0x316   : > { %1066 = vmatmul.mubr.f32.gmra.mrb[18].mxu1 %v609_v38 }
 0x319   : > { %v1014_v40 = vpop.f32.mrb[10].mxu1 }
 0x31a   : > { %v555_v42 = vpop.f32.mrb[11].mxu1  ;;  %v611_v44 = vmul.f32 %v1014_v40, %v595_v41 }
 0x31b   : > { %v610_v43 = vmul.f32 %v594_v39, %v555_v42 }
 0x31d   : > { %1068 = vmatprep.mubr.f32.mxu1 %v610_v43 }
 0x31e   : > { %1069 = vmatmul.mubr.f32.gmra.mrb[20].mxu1 %v611_v44 }
 0x321   : > { %v1017_v46 = vpop.f32.mrb[12].mxu1 }
 0x322   : > { %v565_v48 = vpop.f32.mrb[13].mxu1  ;;  %v613_v50 = vmul.f32 %v1017_v46, %v597_v47 }
 0x323   : > { %v612_v49 = vmul.f32 %v596_v45, %v565_v48 }
 0x325   : > { %1071 = vmatprep.mubr.f32.mxu1 %v612_v49 }
 0x326   : > { %1072 = vmatmul.mubr.f32.gmra.mrb[22].mxu1 %v613_v50 }
 0x329   : > { %v1020_v52 = vpop.f32.mrb[14].mxu1 }
 0x32a   : > { %v575_v54 = vpop.f32.mrb[15].mxu1  ;;  %v615_v56 = vmul.f32 %v1020_v52, %v599_v53 }
 0x32b   : > { %v614_v55 = vmul.f32 %v598_v51, %v575_v54 }
 0x32d   : > { %1074 = vmatprep.mubr.f32.mxu1 %v614_v55 }
 0x32e   : > { %1075 = vmatmul.mubr.f32.gmra.mrb[24].mxu1 %v615_v56 }
 0x3c9   : > { %v1055_v57 = vpop.f32.mrb[2].mxu0 }
 0x3ca   : > { %778 = vst [vmem:[%s1668_s23 + $0x8] sm:$0xff] %v1055_v57  ;;  %v698_v58 = vpop.f32.mrb[3].mxu0 }
 0x3cb   : > { %777 = vst [vmem:[%s1668_s23] sm:$0xff] %v698_v58 }
 0x3d1   : > { %v1058_v59 = vpop.f32.mrb[4].mxu0 }
 0x3d2   : > { %780 = vst [vmem:[%s1668_s23 + $0x18] sm:$0xff] %v1058_v59  ;;  %v708_v60 = vpop.f32.mrb[5].mxu0 }
 0x3d3   : > { %779 = vst [vmem:[%s1668_s23 + $0x10] sm:$0xff] %v708_v60 }
 0x3d9   : > { %v1061_v61 = vpop.f32.mrb[6].mxu0 }
 0x3da   : > { %782 = vst [vmem:[%s1668_s23 + $0x28] sm:$0xff] %v1061_v61  ;;  %v718_v62 = vpop.f32.mrb[7].mxu0 }
 0x3db   : > { %781 = vst [vmem:[%s1668_s23 + $0x20] sm:$0xff] %v718_v62 }
 0x3e1   : > { %v1064_v63 = vpop.f32.mrb[16].mxu1 }
 0x3e2   : > { %784 = vst [vmem:[%s1668_s23 + $0x38] sm:$0xff] %v1064_v63  ;;  %v728_v0 = vpop.f32.mrb[17].mxu1 }
 0x3e3   : > { %783 = vst [vmem:[%s1668_s23 + $0x30] sm:$0xff] %v728_v0 }
 0x3e9   : > { %v1067_v1 = vpop.f32.mrb[18].mxu1 }
 0x3ea   : > { %786 = vst [vmem:[%s1668_s23 + $0x48] sm:$0xff] %v1067_v1  ;;  %v738_v2 = vpop.f32.mrb[19].mxu1 }
 0x3eb   : > { %785 = vst [vmem:[%s1668_s23 + $0x40] sm:$0xff] %v738_v2 }
 0x3f1   : > { %v1070_v3 = vpop.f32.mrb[20].mxu1 }
 0x3f2   : > { %788 = vst [vmem:[%s1668_s23 + $0x58] sm:$0xff] %v1070_v3  ;;  %v748_v4 = vpop.f32.mrb[21].mxu1 }
 0x3f3   : > { %787 = vst [vmem:[%s1668_s23 + $0x50] sm:$0xff] %v748_v4 }
 0x3f9   : > { %v1073_v5 = vpop.f32.mrb[22].mxu1 }
 0x3fa   : > { %790 = vst [vmem:[%s1668_s23 + $0x68] sm:$0xff] %v1073_v5  ;;  %v758_v6 = vpop.f32.mrb[23].mxu1 }
 0x3fb   : > { %789 = vst [vmem:[%s1668_s23 + $0x60] sm:$0xff] %v758_v6 }
 0x401   : > { %v1076_v7 = vpop.f32.mrb[24].mxu1 }
 0x402   : > { %792 = vst [vmem:[%s1668_s23 + $0x78] sm:$0xff] %v1076_v7  ;;  %v768_v8 = vpop.f32.mrb[25].mxu1 }
 0x403   : > { %791 = vst [vmem:[%s1668_s23 + $0x70] sm:$0xff] %v768_v8 }
 0x404   : > { %1348 = shalt.err (!%p1345_p4)
}
 0x405   : > { %s1349_s30 = scalar_lea.hbm %s1689_s8, 2048  ;;  %s1353_s25 = scalar_lea.hbm %s1741_s4, 4096 }
 0x406   : > { %p1350_p0 = scmp.ne.s32.totalorder %s1689_s8, %s1349_s30  ;;  %p1354_p11 = scmp.lt.u32.totalorder %s1689_s8, %s1741_s4 }
 0x407   : > { %p1355_p13 = scmp.lt.u32.totalorder %s1353_s25, %s1349_s30  ;;  %p1357_p10 = scmp.lt.u32.totalorder %s1349_s30, %s1689_s8 }
 0x408   : > { %p1351_p9 = pnand %p1350_p0, %p1590_p5 }
 0x409   : > { %p1356_p6 = por %p1355_p13, %p1354_p11 }
 0x40a   : > { %p1352_p8 = pneg %p1351_p9 }
 0x40b   : > { %p1358_p3 = por %p1357_p10, %p1356_p6 }
 0x40d   : > { %p1359_p7 = pnand %p1358_p3, %p1352_p8 }
 0x40f   : > { %1362 = shalt.err (!%p1359_p7)
}
 0x410   : > { %s1421_s23 = smov 128   ;;  %s1422_s9 = smov 8  }
 0x411   : > { %1147 = dma.vmem_to_hbm [thread:$0]  (%p1590_p5), %s1691_s14, 2048, %s1689_s8, %s794_s12, %s1421_s23, %s1421_s23, %s1422_s9  }
 0x412 PF: > { %s822_s6 = sand.u32 1, %s1397_s15   ;;  %p1759_p12 = scmp.ne.s32.totalorder %s1746_s22, 0 }
 0x413   : > { %p1760_p2 = scmp.ge.s32.totalorder %s1409_s18, 2  ;;  %s823_s7 = scalar_lea.sflag [#allocation4], %s822_s6 }
 0x415   : > { %p1164_p1 = pnand %p1760_p2, %p1759_p12 }
 0x417   : > { %1392 = dma.done.wait (!%p1164_p1), %s823_s7, 2048  }
 0x418   : > { %1394 = vsyncadd (!%p1164_p1), %s823_s7, 4294965248  ;;  %p19_p4 = scmp.ge.s32.totalorder %s1558_s20, 4   ;;  %s1761_s15 = smov %s1401_s16 }
 0x419   : > { %s1762_s16 = smov %s1405_s17  ;;  %s1763_s17 = smov %s1586_s26 }
 0x41a   : > { %s1764_s18 = smov %s1558_s20  ;;  %21 = sbr.rel (!%p19_p4) target bundleno = 7 (0x7), region = 93 }
 0x421   :  { %828 = vsyncpa [#allocation3], 1 }
 0x422   :  { %830 = vsyncpa [#allocation3 + $0x1], 1 }
 0x423   :  { %831 = vsyncpa [#allocation6], 1 }
 0x424   :  { %832 = vsyncpa [#allocation9], 1 }
 0x425   :  { %833 = vsyncpa [#allocation4], 1 }
 0x426   :  { %835 = vsyncpa [#allocation4 + $0x1], 1 }

</bundles_post_ra>
